<compile_context>
chip_gen: v6e
topology: v6e:2x2x1
jax: 0.10.0
libtpu: 0.0.40
codegen_flags: <defaults>
</compile_context>

<pallas_src>
import jax
import jax.numpy as jnp
import numpy as np
from jax import lax
from jax.experimental import pallas as pl
from jax.experimental.pallas import tpu as pltpu


def _round_up(n, m):
    return ((n + m - 1) // m) * m


def _choose_tile(B):
    """Batch-tile size.

    Small B: one block equal to the full array (no (8,128) constraint issues, no pad).
    Large B: ~2048-row, 128-aligned tiles; grid kept >= 2 (even when possible) so the
    parallel batch axis is split across both TensorCores on v7x.
    """
    if B <= 1024:
        return B
    n_tiles = max(2, -(-B // 2048))      # target ~2048 rows per tile
    if n_tiles % 2:                      # even grid -> both v7x cores stay busy
        n_tiles += 1
    return min(4096, _round_up(-(-B // n_tiles), 128))


def mlp_kernel(x_ref, w1_ref, b1_ref, w2_ref, b2_ref, w3_ref, b3_ref, o_ref):
    # x_ref: (TB, in). Weights/biases are full, VMEM-resident blocks.
    x = x_ref[...]
    h1 = jnp.dot(x, w1_ref[...], preferred_element_type=jnp.float32) + b1_ref[...]
    h1 = jnp.maximum(h1, 0.0)                                          # ReLU
    h2 = jnp.dot(h1, w2_ref[...], preferred_element_type=jnp.float32) + b2_ref[...]
    h2 = jnp.maximum(h2, 0.0)                                          # ReLU
    # Final layer (32 -> 1): w3 (1,32) . h2 (TB,32)^T on the (idle) MXU gives the
    # lane-dense (1, TB) output row directly -- no cross-lane reduce / reshape.
    out = lax.dot_general(
        w3_ref[...], h2, (((1,), (1,)), ((), ())),
        preferred_element_type=jnp.float32,
    ) + b3_ref[...]
    o_ref[...] = out.astype(o_ref.dtype)


def stock_price_model(x, params):
    """x: (B, input_size) f32; params: dict of w1,b1,w2,b2,w3,b3. Returns (B, 1)."""
    B, in_size = x.shape
    w1, b1, w2, b2, w3, b3 = (params[k] for k in ("w1", "b1", "w2", "b2", "w3", "b3"))

    TB = _choose_tile(B)
    grid = (pl.cdiv(B, TB),)             # ragged boundary block handled by Pallas

    resident = lambda a: pl.BlockSpec(a.shape, lambda i: (0, 0))  # stays in VMEM

    out_row = pl.pallas_call(
        mlp_kernel,
        out_shape=jax.ShapeDtypeStruct((1, B), jnp.float32),
        grid=grid,
        in_specs=[
            pl.BlockSpec((TB, in_size), lambda i: (i, 0)),   # x: tiled over batch
            resident(w1), resident(b1),
            resident(w2), resident(b2),
            resident(w3), resident(b3),
        ],
        out_specs=pl.BlockSpec((1, TB), lambda i: (0, i)),   # lane-dense output slab
        compiler_params=pltpu.CompilerParams(
            dimension_semantics=("parallel",),               # megacore split on v7x
            vmem_limit_bytes=32 << 20,                       # safe on v5e/v6e/v7x
        ),
    )(x, w1, b1, w2, b2, w3, b3)

    # (1, B) lane-dense row -> (B, 1) column (nn.Linear output shape).
    return out_row.reshape(B, 1)


def init_params(key, input_size):
    """Deterministic init matching nn.Linear shapes (w1/w2 stored (in,out), w3 as (1,32))."""
    ks = jax.random.split(key, 6)

    def lin(kw, kb, fan_in, fan_out):
        bound = 1.0 / np.sqrt(fan_in)
        w = jax.random.uniform(kw, (fan_in, fan_out), jnp.float32, -bound, bound)
        b = jax.random.uniform(kb, (1, fan_out), jnp.float32, -bound, bound)
        return w, b

    w1, b1 = lin(ks[0], ks[1], input_size, 64)
    w2, b2 = lin(ks[2], ks[3], 64, 32)
    w3c, b3 = lin(ks[4], ks[5], 32, 1)       # (32, 1), (1, 1)
    w3 = w3c.T                                # (1, 32) row for the (1, TB) output dot
    return dict(w1=w1, b1=b1, w2=w2, b2=b2, w3=w3, b3=b3)


def reference(x, p):
    h1 = jnp.maximum(x @ p["w1"] + p["b1"], 0.0)
    h2 = jnp.maximum(h1 @ p["w2"] + p["b2"], 0.0)
    return h2 @ p["w3"].T + p["b3"]


if __name__ == "__main__":
    key = jax.random.PRNGKey(0)
    kx, kp = jax.random.split(key)

    batch, input_size = 8, 16
    x = jax.random.normal(kx, (batch, input_size), jnp.float32)
    params = init_params(kp, input_size)

    out = jax.block_until_ready(stock_price_model(x, params))
    assert out.shape == (batch, 1)
    # Tolerance allows for default MXU matmul precision (bf16 passes) vs. the XLA
    # reference; structural errors would show up as O(1) discrepancies.
    np.testing.assert_allclose(
        np.asarray(out), np.asarray(reference(x, params)), rtol=2e-3, atol=2e-3
    )

    # Larger, non-multiple batch exercises the multi-tile path with a ragged
    # boundary block (grid=2, no wrapper pad, masked tail output store).
    x2 = jax.random.normal(kx, (2600, input_size), jnp.float32)
    out2 = jax.block_until_ready(stock_price_model(x2, params))
    assert out2.shape == (2600, 1)
    np.testing.assert_allclose(
        np.asarray(out2), np.asarray(reference(x2, params)), rtol=2e-3, atol=2e-3
    )

    print("KERNEL_OK")
</pallas_src>

<mosaic_0001>
module attributes {stable_mosaic.version = 11 : i64} {
  func.func @mlp_kernel(%arg0: i32, %arg1: memref<8x16xf32, #tpu.memory_space<vmem>>, %arg2: memref<16x64xf32, #tpu.memory_space<vmem>>, %arg3: memref<1x64xf32, #tpu.memory_space<vmem>>, %arg4: memref<64x32xf32, #tpu.memory_space<vmem>>, %arg5: memref<1x32xf32, #tpu.memory_space<vmem>>, %arg6: memref<1x32xf32, #tpu.memory_space<vmem>>, %arg7: memref<1x1xf32, #tpu.memory_space<vmem>>, %arg8: memref<1x8xf32, #tpu.memory_space<vmem>>) attributes {dimension_semantics = [#tpu.dimension_semantics<parallel>], iteration_bounds = array<i64: 1>, scalar_prefetch = 0 : i64, scratch_operands = 0 : i64, tpu.core_type = #tpu.core_type<tc>, window_params = [{transform_indices = @transform_0, window_bounds = array<i64: 8, 16>}, {pipeline_mode = #tpu.pipeline_mode<synchronous>, transform_indices = @transform_1, window_bounds = array<i64: 16, 64>}, {pipeline_mode = #tpu.pipeline_mode<synchronous>, transform_indices = @transform_2, window_bounds = array<i64: 1, 64>}, {pipeline_mode = #tpu.pipeline_mode<synchronous>, transform_indices = @transform_3, window_bounds = array<i64: 64, 32>}, {pipeline_mode = #tpu.pipeline_mode<synchronous>, transform_indices = @transform_4, window_bounds = array<i64: 1, 32>}, {pipeline_mode = #tpu.pipeline_mode<synchronous>, transform_indices = @transform_5, window_bounds = array<i64: 1, 32>}, {pipeline_mode = #tpu.pipeline_mode<synchronous>, transform_indices = @transform_6, window_bounds = array<i64: 1, 1>}, {transform_indices = @transform_7, window_bounds = array<i64: 1, 8>}]} {
    %c0 = arith.constant 0 : index
    %c0_0 = arith.constant 0 : index
    %0 = vector.load %arg1[%c0, %c0_0] : memref<8x16xf32, #tpu.memory_space<vmem>>, vector<8x16xf32>
    %c0_1 = arith.constant 0 : index
    %c0_2 = arith.constant 0 : index
    %1 = vector.load %arg2[%c0_1, %c0_2] : memref<16x64xf32, #tpu.memory_space<vmem>>, vector<16x64xf32>
    %cst = arith.constant dense<0.000000e+00> : vector<8x64xf32>
    %2 = tpu.matmul %0, %1, %cst {dimension_numbers = #tpu.dot_dimension_numbers<[1], [0], [0], [1], [0, 0, 1, 1], [], []>} : vector<8x16xf32>, vector<16x64xf32>, vector<8x64xf32> -> vector<8x64xf32>
    %c0_3 = arith.constant 0 : index
    %c0_4 = arith.constant 0 : index
    %3 = vector.load %arg3[%c0_3, %c0_4] : memref<1x64xf32, #tpu.memory_space<vmem>>, vector<1x64xf32>
    %4 = vector.broadcast %3 : vector<1x64xf32> to vector<8x64xf32>
    %5 = arith.addf %2, %4 : vector<8x64xf32>
    %cst_5 = arith.constant 0.000000e+00 : f32
    %6 = vector.broadcast %cst_5 : f32 to vector<8x64xf32>
    %7 = arith.maximumf %5, %6 : vector<8x64xf32>
    %c0_6 = arith.constant 0 : index
    %c0_7 = arith.constant 0 : index
    %8 = vector.load %arg4[%c0_6, %c0_7] : memref<64x32xf32, #tpu.memory_space<vmem>>, vector<64x32xf32>
    %cst_8 = arith.constant dense<0.000000e+00> : vector<8x32xf32>
    %9 = tpu.matmul %7, %8, %cst_8 {dimension_numbers = #tpu.dot_dimension_numbers<[1], [0], [0], [1], [0, 0, 1, 1], [], []>} : vector<8x64xf32>, vector<64x32xf32>, vector<8x32xf32> -> vector<8x32xf32>
    %c0_9 = arith.constant 0 : index
    %c0_10 = arith.constant 0 : index
    %10 = vector.load %arg5[%c0_9, %c0_10] : memref<1x32xf32, #tpu.memory_space<vmem>>, vector<1x32xf32>
    %11 = vector.broadcast %10 : vector<1x32xf32> to vector<8x32xf32>
    %12 = arith.addf %9, %11 : vector<8x32xf32>
    %cst_11 = arith.constant 0.000000e+00 : f32
    %13 = vector.broadcast %cst_11 : f32 to vector<8x32xf32>
    %14 = arith.maximumf %12, %13 : vector<8x32xf32>
    %c0_12 = arith.constant 0 : index
    %c0_13 = arith.constant 0 : index
    %15 = vector.load %arg6[%c0_12, %c0_13] : memref<1x32xf32, #tpu.memory_space<vmem>>, vector<1x32xf32>
    %cst_14 = arith.constant dense<0.000000e+00> : vector<1x8xf32>
    %16 = tpu.matmul %15, %14, %cst_14 {dimension_numbers = #tpu.dot_dimension_numbers<[1], [1], [0], [0], [0, 0, 1, 0], [], []>} : vector<1x32xf32>, vector<8x32xf32>, vector<1x8xf32> -> vector<1x8xf32>
    %c0_15 = arith.constant 0 : index
    %c0_16 = arith.constant 0 : index
    %17 = vector.load %arg7[%c0_15, %c0_16] : memref<1x1xf32, #tpu.memory_space<vmem>>, vector<1x1xf32>
    %18 = vector.broadcast %17 : vector<1x1xf32> to vector<1x8xf32>
    %19 = arith.addf %16, %18 : vector<1x8xf32>
    %c0_17 = arith.constant 0 : index
    %c0_18 = arith.constant 0 : index
    %20 = vector.load %arg8[%c0_17, %c0_18] : memref<1x8xf32, #tpu.memory_space<vmem>>, vector<1x8xf32>
    tpu.vector_store %arg8[%c0_17, %c0_18], %19 {strides = array<i32>} : memref<1x8xf32, #tpu.memory_space<vmem>>, vector<1x8xf32>,
    return
  }
  func.func @transform_0(%arg0: i32) -> (i32, i32) {
    %c0_i32 = arith.constant 0 : i32
    %c0_i32_0 = arith.constant 0 : i32
    return %arg0, %c0_i32 : i32, i32
  }
  func.func @transform_1(%arg0: i32) -> (i32, i32) {
    %c0_i32 = arith.constant 0 : i32
    %c0_i32_0 = arith.constant 0 : i32
    %c0_i32_1 = arith.constant 0 : i32
    return %c0_i32, %c0_i32_0 : i32, i32
  }
  func.func @transform_2(%arg0: i32) -> (i32, i32) {
    %c0_i32 = arith.constant 0 : i32
    %c0_i32_0 = arith.constant 0 : i32
    %c0_i32_1 = arith.constant 0 : i32
    return %c0_i32, %c0_i32_0 : i32, i32
  }
  func.func @transform_3(%arg0: i32) -> (i32, i32) {
    %c0_i32 = arith.constant 0 : i32
    %c0_i32_0 = arith.constant 0 : i32
    %c0_i32_1 = arith.constant 0 : i32
    return %c0_i32, %c0_i32_0 : i32, i32
  }
  func.func @transform_4(%arg0: i32) -> (i32, i32) {
    %c0_i32 = arith.constant 0 : i32
    %c0_i32_0 = arith.constant 0 : i32
    %c0_i32_1 = arith.constant 0 : i32
    return %c0_i32, %c0_i32_0 : i32, i32
  }
  func.func @transform_5(%arg0: i32) -> (i32, i32) {
    %c0_i32 = arith.constant 0 : i32
    %c0_i32_0 = arith.constant 0 : i32
    %c0_i32_1 = arith.constant 0 : i32
    return %c0_i32, %c0_i32_0 : i32, i32
  }
  func.func @transform_6(%arg0: i32) -> (i32, i32) {
    %c0_i32 = arith.constant 0 : i32
    %c0_i32_0 = arith.constant 0 : i32
    %c0_i32_1 = arith.constant 0 : i32
    return %c0_i32, %c0_i32_0 : i32, i32
  }
  func.func @transform_7(%arg0: i32) -> (i32, i32) {
    %c0_i32 = arith.constant 0 : i32
    %c0_i32_0 = arith.constant 0 : i32
    return %c0_i32, %arg0 : i32, i32
  }
}

</mosaic_0001>

<bundles_post_ra>
// kernel: tpu_custom_call.1
= control target key start
LH: loop header
LB: loop body
LE: loop exit
PB: predicated region body
PF: predicated region fallthrough
CT: control target
= control target key end

     0   :  { %s481_s0 = inlined_call_operand.vmem [shape: f32[8,16], index: 0, kind: input, shape index: {}]   ;;  %s482_s1 = inlined_call_operand.vmem [shape: f32[16,64], index: 1, kind: input, shape index: {}]   ;;  %s483_s2 = inlined_call_operand.vmem [shape: f32[1,64], index: 2, kind: input, shape index: {}]   ;;  %s484_s3 = inlined_call_operand.vmem [shape: f32[64,32], index: 3, kind: input, shape index: {}]   ;;  %s485_s4 = inlined_call_operand.vmem [shape: f32[1,32], index: 4, kind: input, shape index: {}]   ;;  %s486_s5 = inlined_call_operand.vmem [shape: f32[1,32], index: 5, kind: input, shape index: {}]   ;;  %s487_s6 = inlined_call_operand.<no memory space> [shape: f32[1,1], index: 6, kind: input, shape index: {}]   ;;  %s488_s7 = inlined_call_operand.hbm [shape: f32[1,8], index: 7, kind: output, shape index: {}]  }
   0x1   :  { %v12_v0 = vstv %s487_s6 }
   0x2   :  { %13 = vst [vmem:[#allocation2] sm:$0x1] %v12_v0 }
   0x3   :  { %v31_v1 = vld [vmem:[%s482_s1 + $0x8] sm:$0xff]  ;;  %v386_v2 = vmov 0.0   ;;  %v30_v3 = vld [vmem:[%s482_s1] sm:$0xff]  ;;  %vm387_vm0 = vmmov 0   ;;  %v121_v4 = vld [vmem:[%s484_s3 + $0x38] sm:$0xff]  ;;  %vm39_vm1 = vcmask 130048  }
   0x4   :  { %328 = vmatprep.subr.mxu0 %v386_v2  ;;  %332 = vmatprep.mubr.msk.f32.mxu0 %vm387_vm0, %v386_v2  ;;  %v29_v5 = vld [vmem:[%s481_s0] sm:$0xff]  ;;  %v120_v6 = vld [vmem:[%s484_s3 + $0x30] sm:$0xff] }
   0x5   :  { %329 = vmatpush3.msra.mxu0 %v31_v1  ;;  %335 = vmatprep.subr.mxu1 %v386_v2 }
   0x6   :  { %330 = vmatprep.subr.mxu0 %v386_v2  ;;  %336 = vmatpush3.msra.mxu1 %v121_v4 }
   0x7   :  { %14 = vsyncpa [#allocation4], 0  ;;  %331 = vmatpush3.msra.mxu0 %v30_v3  ;;  %337 = vmatprep.subr.mxu1 %v386_v2  ;;  %v119_v7 = vld [vmem:[%s484_s3 + $0x28] sm:$0xff]  ;;  %v118_v8 = vld [vmem:[%s484_s3 + $0x20] sm:$0xff]  ;;  %vm129_vm2 = vcmask 523264   ;;  %v388_v19 = vmov 0   ;;  %v211_v26 = vlaneseq }
   0x8   :  { %333 = vmatmul.mubr.msk.f32.vlgmr.msra.gmra.mxu0 %vm39_vm1, %v29_v5  ;;  %338 = vmatpush3.msra.mxu1 %v120_v6  ;;  %v117_v9 = vld [vmem:[%s484_s3 + $0x18] sm:$0xff]  ;;  %v116_v10 = vld [vmem:[%s484_s3 + $0x10] sm:$0xff]  ;;  %v115_v11 = vld [vmem:[%s484_s3 + $0x8] sm:$0xff]  ;;  %vm215_vm3 = vcmask 261120   ;;  %s389_s26 = smov [#allocation3]   ;;  %vm292_vm4 = vcmask 57344  }
   0x9   :  { %339 = vmatprep.subr.mxu1 %v386_v2  ;;  %351 = vmatprep.mubr.msk.f32.mxu1 %vm387_vm0, %v386_v2  ;;  %v114_v12 = vld [vmem:[%s484_s3] sm:$0xff]  ;;  %v212_v27 = vshrl.u32 %v211_v26, 7  ;;  %s300_s27 = sshll.u32 %s389_s26, 4  ;;  %s301_s27 = int_to_ptr.vmem [resolvable:$true] %s300_s27 }
   0xa   :  { %340 = vmatpush3.msra.mxu1 %v119_v7  ;;  %354 = vmatprep.subr.mxu0 %v386_v2  ;;  %v308_v13 = vld [vmem:[%s483_s2] ss:$0 sm:$0xff]  ;;  %s368_s28 = scalar_lea.vmem %s301_s27, 32  ;;  %p369_p1 = scmp.lt.s32.totalorder %s301_s27, %s301_s27 }
   0xb   :  { %341 = vmatprep.subr.mxu1 %v386_v2  ;;  %356 = vmatprep.mubr.msk.f32.mxu0 %vm387_vm0, %v386_v2  ;;  %v205_v18 = vld [vmem:[#allocation2] sm:$0x1]  ;;  %v213_v28 = vsub.s32 0, %v212_v27 }
   0xc   :  { %342 = vmatpush3.msra.mxu1 %v118_v8  ;;  %363 = vset.pattern.permute.xlu0 %v388_v19  ;;  %v310_v20 = vld [vmem:[%s485_s4] ss:$0 sm:$0xff]  ;;  %s364_s4 = scalar_lea.vmem %s301_s27, 16 }
   0xd   :  { %343 = vmatprep.subr.mxu1 %v386_v2  ;;  %208 = vperm.xlu0 %363, %v205_v18   ;;  %v204_v25 = vld [vmem:[%s486_s5] sm:$0x1]  ;;  %p365_p0 = scmp.ne.s32.totalorder %s301_s27, %s364_s4  ;;  %p370_p2 = scmp.lt.s32.totalorder %s368_s28, %s364_s4 }
   0xe   :  { %344 = vmatpush3.msra.mxu1 %v117_v9 }
   0xf   :  { %345 = vmatprep.subr.mxu1 %v386_v2  ;;  %p371_p3 = por %p370_p2, %p369_p1 }
  0x10   :  { %346 = vmatpush3.msra.mxu1 %v116_v10 }
  0x11   :  { %347 = vmatprep.subr.mxu1 %v386_v2  ;;  %p372_p4 = pnand %p371_p3, %p365_p0 }
  0x12   :  { %348 = vmatpush3.msra.mxu1 %v115_v11 }
  0x13   :  { %349 = vmatprep.subr.mxu1 %v386_v2 }
  0x14   :  { %350 = vmatpush3.msra.mxu1 %v114_v12 }
  0x88   :  { %v209_v29 = vpop.permute.xlu0 %208 }
  0x89   :  { %v214_v30 = vrot.slane %v209_v29, %v213_v28 }
  0xc8   :  { %v109_v14 = vpop.f32.mrf.mxu0 }
  0xc9   :  { %v110_v15 = vadd.f32 %v308_v13, %v109_v14 }
  0xca   :  { %v334_v16 = vpop.f32.mrf.mxu0 }
  0xcb   :  { %v113_v17 = vmax.f32 %v110_v15, 0.0 }
  0xcd   :  { %352 = vmatmul.mubr.msk.f32.vlgmr.msra.gmra.mxu1 %vm129_vm2, %v113_v17 }
 0x18d   :  { %v199_v21 = vpop.f32.mrf.mxu1 }
 0x18e   :  { %v200_v22 = vadd.f32 %v310_v20, %v199_v21 }
 0x18f   :  { %v353_v23 = vpop.f32.mrf.mxu1 }
 0x190   :  { %v203_v24 = vmax.f32 %v200_v22, 0.0 }
 0x192   :  { %355 = vmatpush3.xpose.msk.msra.mxu0 %vm215_vm3, %v203_v24 }
 0x195   :  { %357 = vmatmul.mubr.msk.f32.vlgmr.msra.gmra.mxu0 %vm215_vm3, %v204_v25 }
 0x255   :  { %v288_v31 = vpop.f32.mrf.mxu0 }
 0x256   :  { %v289_v32 = vadd.f32 %v288_v31, %v214_v30 }
 0x257   :  { %v358_v33 = vpop.f32.mrf.mxu0 }
 0x258   :  { %293 = vst.msk [vmem:[#allocation3] sm:$0x1] %vm292_vm4, %v289_v32 }
 0x259   :  { %375 = shalt.err (!%p372_p4)
}
 0x25a   :  { %303 = dma.vmem_to_hbm [thread:$0]  %s301_s27, 16, %s488_s7, [#allocation4]  }
 0x25b   :  { %384 = dma.done.wait [#allocation4], 16  }
 0x25c   :  { %385 = vsyncadd [#allocation4], 4294967280 }
 0x25d   :  { %307 = vsyncpa [#allocation4], 1 }

</bundles_post_ra>
